<compile_context>
chip_gen: v7x
topology: tpu7x:2x2x1
jax: 0.10.0
libtpu: 0.0.40
codegen_flags: <defaults>
</compile_context>

<pallas_src>
import functools

import jax
import jax.numpy as jnp
from jax import lax
from jax.experimental import pallas as pl
from jax.experimental.pallas import tpu as pltpu


def _vmem_capacity_bytes():
    """Physical VMEM per TensorCore; conservative 64 MiB (v7x) fallback."""
    try:
        info = pltpu.get_tpu_info()
    except Exception:
        return 64 * 1024 * 1024
    for name in ("vmem_capacity_bytes", "vmem_size_bytes", "vmem_bytes"):
        cap = getattr(info, name, None)
        if cap:
            try:
                cap = int(cap)
            except Exception:
                continue
            if cap > 0:
                return cap
    return 64 * 1024 * 1024


def cam_kernel(x_ref, gamma_ref, o_ref, e_acc, m_scr, l_scr, *cache_refs,
               n_true, needs_mask, use_cache, mxu_dtype):
    """One grid step of (batch block b, phase p, spatial tile n).

    x_ref     : (bt, C, tile_n) input tile in VMEM (native dtype)
    gamma_ref : (1,) f32 scalar in SMEM
    o_ref     : (bt, C, tile_n) output tile (written only in phase 2)
    e_acc     : (bt, C, C) f32 scratch; energy accumulator, then channel attn
    m_scr/l_scr : (bt, C, 1) f32 running max / sum of the spatial softmax
    cache_refs (only when use_cache):
      m_tiles : (nt, bt, C, 1) f32 per-tile max of attn@x
      pcache  : (nt, bt, C, tile_n) cached exp(ot - m_tile)
    """
    if use_cache:
        m_tiles, pcache = cache_refs

    p = pl.program_id(1)
    n = pl.program_id(2)
    tile_n = x_ref.shape[-1]

    def mxu_feed():
        xt = x_ref[...]
        return xt if mxu_dtype is None else xt.astype(mxu_dtype)

    # ---------------- phase 0: accumulate the channel-channel Gram matrix --------
    @pl.when(jnp.logical_and(p == 0, n == 0))
    def _():
        e_acc[...] = jnp.zeros_like(e_acc)

    @pl.when(p == 0)
    def _():
        xm = mxu_feed()
        e_acc[...] += jnp.einsum('bcn,bdn->bcd', xm, xm,
                                 preferred_element_type=jnp.float32)

    # -------- phase 1, first tile: channel softmax (in place) + stats init -------
    @pl.when(jnp.logical_and(p == 1, n == 0))
    def _():
        e = e_acc[...]
        # softmax(rowmax(E) - E) == exp(rowmin(E) - E) / sum(exp(rowmin(E) - E)):
        # a single row reduction.  The denominator is only (bt, C, 1) values, so
        # use an exact reciprocal here (accuracy for free).
        mn = jnp.min(e, axis=-1, keepdims=True)
        ex = jnp.exp(mn - e)
        denom = jnp.sum(ex, axis=-1, keepdims=True)
        e_acc[...] = ex * (1.0 / denom)               # e_acc now holds the attention
        m_scr[...] = jnp.full_like(m_scr, -jnp.inf)
        l_scr[...] = jnp.zeros_like(l_scr)

    def attn_times_value():
        xm = mxu_feed()
        attn = e_acc[...].astype(xm.dtype)            # MXU feed dtype, f32 accumulate
        return jnp.einsum('bcd,bdn->bcn', attn, xm,
                          preferred_element_type=jnp.float32)

    def mask_pad(ot):
        if not needs_mask:
            return ot
        col = n * tile_n + lax.broadcasted_iota(jnp.int32, ot.shape, 2)
        return jnp.where(col < n_true, ot, -jnp.inf)

    # -------- phase 1: online max/sum of the spatial softmax (+ p cache) ---------
    @pl.when(p == 1)
    def _():
        ot = mask_pad(attn_times_value())
        m_old = m_scr[...]
        # Every tile contains >= 1 real column (asserted in the wrapper), so
        # m_tile is finite and no exp(-inf - -inf) NaN can appear.
        m_tile = jnp.max(ot, axis=-1, keepdims=True)
        m_new = jnp.maximum(m_old, m_tile)
        if use_cache:
            p_tile = jnp.exp(ot - m_tile)             # padded cols -> exp(-inf) == 0
            m_tiles[n] = m_tile
            pcache[n] = p_tile.astype(pcache.dtype)
            l_scr[...] = (l_scr[...] * jnp.exp(m_old - m_new)
                          + jnp.sum(p_tile, axis=-1, keepdims=True)
                          * jnp.exp(m_tile - m_new))
        else:
            l_scr[...] = (l_scr[...] * jnp.exp(m_old - m_new)
                          + jnp.sum(jnp.exp(ot - m_new), axis=-1, keepdims=True))
        m_scr[...] = m_new

    # ------ phase 2: rescale cached softmax, residual add, lane-dense store ------
    @pl.when(p == 2)
    def _():
        inv_l = pl.reciprocal(l_scr[...], approx=True)
        gamma = gamma_ref[0]
        if use_cache:
            scale = jnp.exp(m_tiles[n] - m_scr[...]) * inv_l
            soft = pcache[n].astype(jnp.float32) * scale
        else:
            # Fallback (cache did not fit in VMEM): recompute attn @ x.
            ot = attn_times_value()
            soft = jnp.exp(ot - m_scr[...]) * inv_l
        o_ref[...] = (x_ref[...].astype(jnp.float32) + gamma * soft).astype(o_ref.dtype)


def cam_module(x, gamma, *, tile_n=None, batch_tile=None, use_cache=None,
               mxu_dtype=None):
    """CAM_Module forward. x: (B, C, H, W); gamma: scalar or (1,). -> (B, C, H, W)."""
    B, C, H, W = x.shape
    N = H * W
    n_pad = ((N + 127) // 128) * 128                  # lane-dense spatial extent

    xf = x.reshape(B, C, N)
    if n_pad != N:
        xf = jnp.pad(xf, ((0, 0), (0, 0), (0, n_pad - N)))
    gamma = jnp.reshape(jnp.asarray(gamma, jnp.float32), (1,))

    if mxu_dtype is not None and jnp.dtype(mxu_dtype) == jnp.dtype(x.dtype):
        mxu_dtype = None
    feed_dtype = jnp.dtype(mxu_dtype) if mxu_dtype is not None else jnp.dtype(x.dtype)

    itemsize = jnp.dtype(x.dtype).itemsize
    cache_dtype = jnp.bfloat16 if feed_dtype == jnp.dtype(jnp.bfloat16) else jnp.float32
    cache_itemsize = jnp.dtype(cache_dtype).itemsize

    # Batch blocking: several batch elements per grid step when C is small, but
    # keep >= 2 blocks on the parallel batch axis so v7x's two TCs stay busy.
    if batch_tile is None:
        bt = 1
        if C <= 128 and B > 1:
            cap = max(1, B // 2)
            for cand in range(min(cap, max(1, 256 // C)), 0, -1):
                if B % cand == 0:
                    bt = cand
                    break
    else:
        bt = int(batch_tile)
    assert B % bt == 0, "batch_tile must divide the batch size"

    # ------------- VMEM budget (generation aware) and tile_n selection -----------
    vmem_cap = _vmem_capacity_bytes()
    vmem_budget = max(32 * 1024 * 1024,
                      min(vmem_cap * 3 // 4, vmem_cap - 8 * 1024 * 1024))

    def vmem_bytes(tn, with_cache):
        per_tile = bt * C * tn
        total = 2 * bt * C * C * 4                    # e_acc + its einsum temporary
        total += 2 * (2 * per_tile * itemsize)        # double-buffered in + out blocks
        total += 3 * per_tile * 4                     # materialized f32 ot / exp temps
        if with_cache:
            total += bt * C * n_pad * cache_itemsize  # p cache over the full N
            total += (n_pad // tn) * bt * C * 4       # per-tile running max
        return total

    if tile_n is None:
        cands = {n_pad, n_pad // 2, n_pad // 4, 4096, 2048, 1024, 512, 256, 128}
        cands = sorted({c for c in cands
                        if c >= 128 and c % 128 == 0 and n_pad % c == 0},
                       reverse=True)
        cache_prefs = (True, False) if use_cache is None else (bool(use_cache),)
        tile_sel, cache_sel = None, False
        for pref in cache_prefs:
            for tn in cands:                          # biggest lane-dense tile that fits
                if vmem_bytes(tn, pref) <= vmem_budget:
                    tile_sel, cache_sel = tn, pref
                    break
            if tile_sel is not None:
                break
        if tile_sel is None:
            tile_sel, cache_sel = 128, False          # last resort
        tile_n, use_cache = tile_sel, cache_sel
    else:
        tile_n = int(tile_n)
        if use_cache is None:
            use_cache = vmem_bytes(tile_n, True) <= vmem_budget
    use_cache = bool(use_cache)

    assert n_pad % tile_n == 0, "tile_n must divide the padded spatial size"
    # Every spatial tile must contain at least one real column, otherwise the
    # online softmax would see an all -inf row (padding < 128 <= tile_n).
    assert n_pad - N < tile_n
    nt = n_pad // tile_n

    scratch = [
        pltpu.VMEM((bt, C, C), jnp.float32),          # energy -> attention
        pltpu.VMEM((bt, C, 1), jnp.float32),          # running row max
        pltpu.VMEM((bt, C, 1), jnp.float32),          # running row sum
    ]
    if use_cache:
        scratch += [
            pltpu.VMEM((nt, bt, C, 1), jnp.float32),        # per-tile max
            pltpu.VMEM((nt, bt, C, tile_n), cache_dtype),   # cached exp(ot - m_tile)
        ]

    kernel = functools.partial(
        cam_kernel, n_true=N, needs_mask=(n_pad != N), use_cache=use_cache,
        mxu_dtype=(None if mxu_dtype is None else jnp.dtype(mxu_dtype)))

    matmul_passes = 2 if use_cache else 3             # energy + 1 or 2 attn@x passes
    x_reads = 1 if nt == 1 else 3                     # block-index reuse when nt == 1
    cost = pl.CostEstimate(
        flops=2 * matmul_passes * B * C * C * n_pad,
        transcendentals=B * C * (C + (1 if use_cache else 2) * n_pad),
        bytes_accessed=(x_reads + 1) * B * C * n_pad * itemsize)

    out = pl.pallas_call(
        kernel,
        out_shape=jax.ShapeDtypeStruct((B, C, n_pad), x.dtype),
        grid_spec=pltpu.PrefetchScalarGridSpec(
            num_scalar_prefetch=0,
            grid=(B // bt, 3, nt),                    # (batch blocks, phase, N tiles)
            in_specs=[
                # When nt == 1 the block index is (b, 0, 0) for all three phases,
                # so Pallas fetches x from HBM once per batch block.
                # (A pl.Buffered(3) sweep on this spec is a possible few-% win
                #  when nt > 1; left at the default pending HW measurement.)
                pl.BlockSpec((bt, C, tile_n), lambda b, p, n: (b, 0, n)),
                pl.BlockSpec(memory_space=pltpu.MemorySpace.SMEM),   # gamma scalar
            ],
            # Output block parked on tile 0 during phases 0/1 (never flushed,
            # index unchanged) and only walks the spatial tiles in phase 2 once
            # real data is written -> no garbage writebacks, safe to alias.
            out_specs=pl.BlockSpec(
                (bt, C, tile_n),
                lambda b, p, n: (b, 0, jnp.where(p == 2, n, 0))),
            scratch_shapes=scratch,
        ),
        compiler_params=pltpu.CompilerParams(
            dimension_semantics=("parallel", "arbitrary", "arbitrary"),
            vmem_limit_bytes=int(vmem_budget)),
        input_output_aliases={0: 0},                  # write result in place of the x copy
        cost_estimate=cost,
    )(xf, gamma)

    return out[:, :, :N].reshape(B, C, H, W)


def cam_reference(x, gamma):
    """Pure-JAX reference mirroring the PyTorch CAM_Module forward."""
    B, C, H, W = x.shape
    q = x.reshape(B, C, -1)
    energy = jnp.einsum('bcn,bdn->bcd', q, q)
    energy = jnp.max(energy, axis=-1, keepdims=True) - energy
    attn = jax.nn.softmax(energy, axis=-1)
    out = jnp.einsum('bcd,bdn->bcn', attn, q)
    out = jax.nn.softmax(out, axis=-1)
    return x + gamma * out.reshape(B, C, H, W)


if __name__ == "__main__":
    key = jax.random.PRNGKey(0)
    k1, k2 = jax.random.split(key)

    # Nonzero gamma so the attention/softmax path actually affects the output.
    gamma = jnp.array([0.75], dtype=jnp.float32)

    cam = jax.jit(cam_module,
                  static_argnames=("tile_n", "batch_tile", "use_cache", "mxu_dtype"))

    # (1) default config: whole-N tile (single x fetch per batch block) + p cache
    B, C, H, W = 2, 8, 16, 16
    x = jax.random.normal(k1, (B, C, H, W), dtype=jnp.float32)
    ref = cam_reference(x, gamma)
    out = jax.block_until_ready(cam(x, gamma))
    assert out.shape == (B, C, H, W)
    assert jnp.allclose(out, ref, atol=1e-3, rtol=1e-3), \
        f"max err {jnp.max(jnp.abs(out - ref))}"

    # (2) multiple spatial tiles -> online spatial softmax + cached-p rescale path
    out_t = jax.block_until_ready(cam(x, gamma, tile_n=128))
    assert jnp.allclose(out_t, ref, atol=1e-3, rtol=1e-3), \
        f"max err {jnp.max(jnp.abs(out_t - ref))}"

    # (3) no-cache fallback (recompute attn@x in phase 2)
    out_nc = jax.block_until_ready(cam(x, gamma, tile_n=128, use_cache=False))
    assert jnp.allclose(out_nc, ref, atol=1e-3, rtol=1e-3), \
        f"max err {jnp.max(jnp.abs(out_nc - ref))}"

    # (4) H*W not a multiple of 128 -> lane padding + masking (N=240)
    x2 = jax.random.normal(k2, (2, 8, 16, 15), dtype=jnp.float32)
    ref2 = cam_reference(x2, gamma)
    out2 = jax.block_until_ready(cam(x2, gamma, tile_n=128))
    assert jnp.allclose(out2, ref2, atol=1e-3, rtol=1e-3), \
        f"max err {jnp.max(jnp.abs(out2 - ref2))}"

    # (5) bf16 MXU feed from an f32 input (production fast path) — reduced precision,
    #     checked against the f32 reference with a correspondingly looser tolerance.
    out_bf = jax.block_until_ready(cam(x, gamma, mxu_dtype=jnp.bfloat16))
    assert jnp.allclose(out_bf, ref, atol=5e-2, rtol=5e-2), \
        f"max err {jnp.max(jnp.abs(out_bf - ref))}"

    print("KERNEL_OK")
</pallas_src>

<mosaic_0001>
module attributes {stable_mosaic.version = 11 : i64} {
  func.func @cam_kernel(%arg0: i32, %arg1: i32, %arg2: i32, %arg3: memref<1x8x256xf32, #tpu.memory_space<vmem>>, %arg4: memref<1xf32, #tpu.memory_space<smem>>, %arg5: memref<1x8x256xf32, #tpu.memory_space<vmem>>, %arg6: memref<1x8x8xf32, #tpu.memory_space<vmem>>, %arg7: memref<1x8x1xf32, #tpu.memory_space<vmem>>, %arg8: memref<1x8x1xf32, #tpu.memory_space<vmem>>, %arg9: memref<1x1x8x1xf32, #tpu.memory_space<vmem>>, %arg10: memref<1x1x8x256xf32, #tpu.memory_space<vmem>>) attributes {dimension_semantics = [#tpu.dimension_semantics<parallel>, #tpu.dimension_semantics<arbitrary>, #tpu.dimension_semantics<arbitrary>], iteration_bounds = array<i64: 2, 3, 1>, scalar_prefetch = 0 : i64, scratch_operands = 5 : i64, tpu.core_type = #tpu.core_type<tc>, window_params = [{transform_indices = @transform_0, window_bounds = array<i64: 1, 8, 256>}, {transform_indices = @transform_1, window_bounds = array<i64: 1>}, {transform_indices = @transform_2, window_bounds = array<i64: 1, 8, 256>}]} {
    %c0_i32 = arith.constant 0 : i32
    %0 = arith.cmpi eq, %arg1, %c0_i32 : i32
    %c0_i32_0 = arith.constant 0 : i32
    %1 = arith.cmpi eq, %arg2, %c0_i32_0 : i32
    %2 = arith.andi %0, %1 : i1
    %3 = arith.extui %2 : i1 to i32
    %c0_i32_1 = arith.constant 0 : i32
    %4 = arith.cmpi ne, %3, %c0_i32_1 : i32
    scf.if %4 {
      %cst = arith.constant 0.000000e+00 : f32
      %19 = vector.broadcast %cst : f32 to vector<1x8x8xf32>
      %c0 = arith.constant 0 : index
      %c0_9 = arith.constant 0 : index
      %c0_10 = arith.constant 0 : index
      %20 = vector.load %arg6[%c0, %c0_9, %c0_10] : memref<1x8x8xf32, #tpu.memory_space<vmem>>, vector<1x8x8xf32>
      tpu.vector_store %arg6[%c0, %c0_9, %c0_10], %19 {strides = array<i32>} : memref<1x8x8xf32, #tpu.memory_space<vmem>>, vector<1x8x8xf32>,
    } else {
    }
    %c0_i32_2 = arith.constant 0 : i32
    %5 = arith.cmpi eq, %arg1, %c0_i32_2 : i32
    %6 = arith.extui %5 : i1 to i32
    %c0_i32_3 = arith.constant 0 : i32
    %7 = arith.cmpi ne, %6, %c0_i32_3 : i32
    scf.if %7 {
      %c0 = arith.constant 0 : index
      %c0_9 = arith.constant 0 : index
      %c0_10 = arith.constant 0 : index
      %19 = vector.load %arg3[%c0, %c0_9, %c0_10] : memref<1x8x256xf32, #tpu.memory_space<vmem>>, vector<1x8x256xf32>
      %c0_11 = arith.constant 0 : index
      %c0_12 = arith.constant 0 : index
      %c0_13 = arith.constant 0 : index
      %20 = vector.load %arg6[%c0_11, %c0_12, %c0_13] : memref<1x8x8xf32, #tpu.memory_space<vmem>>, vector<1x8x8xf32>
      "tpu.trace_start"() <{level = 10 : i32, message = "bcn,bdn->bcd"}> : () -> ()
      %cst = arith.constant dense<0.000000e+00> : vector<1x8x8xf32>
      %21 = tpu.matmul %19, %19, %cst {dimension_numbers = #tpu.dot_dimension_numbers<[2], [2], [1], [1], [0, 0, 0, 1, 1, 1], [0], [0]>} : vector<1x8x256xf32>, vector<1x8x256xf32>, vector<1x8x8xf32> -> vector<1x8x8xf32>
      "tpu.trace_stop"() : () -> ()
      %22 = arith.addf %20, %21 : vector<1x8x8xf32>
      %c0_14 = arith.constant 0 : index
      %c0_15 = arith.constant 0 : index
      %c0_16 = arith.constant 0 : index
      %23 = vector.load %arg6[%c0_14, %c0_15, %c0_16] : memref<1x8x8xf32, #tpu.memory_space<vmem>>, vector<1x8x8xf32>
      tpu.vector_store %arg6[%c0_14, %c0_15, %c0_16], %22 {strides = array<i32>} : memref<1x8x8xf32, #tpu.memory_space<vmem>>, vector<1x8x8xf32>,
    } else {
    }
    %c1_i32 = arith.constant 1 : i32
    %8 = arith.cmpi eq, %arg1, %c1_i32 : i32
    %c0_i32_4 = arith.constant 0 : i32
    %9 = arith.cmpi eq, %arg2, %c0_i32_4 : i32
    %10 = arith.andi %8, %9 : i1
    %11 = arith.extui %10 : i1 to i32
    %c0_i32_5 = arith.constant 0 : i32
    %12 = arith.cmpi ne, %11, %c0_i32_5 : i32
    scf.if %12 {
      %c0 = arith.constant 0 : index
      %c0_9 = arith.constant 0 : index
      %c0_10 = arith.constant 0 : index
      %19 = vector.load %arg6[%c0, %c0_9, %c0_10] : memref<1x8x8xf32, #tpu.memory_space<vmem>>, vector<1x8x8xf32>
      %cst = arith.constant dense<0x7F800000> : vector<1x8xf32>
      %20 = vector.multi_reduction <minimumf>, %19, %cst [2] : vector<1x8x8xf32> to vector<1x8xf32>
      %21 = vector.shape_cast %20 : vector<1x8xf32> to vector<1x8x1xf32>
      %22 = vector.broadcast %21 : vector<1x8x1xf32> to vector<1x8x8xf32>
      %23 = arith.subf %22, %19 : vector<1x8x8xf32>
      %24 = math.exp %23 : vector<1x8x8xf32>
      %cst_11 = arith.constant dense<0.000000e+00> : vector<1x8xf32>
      %25 = vector.multi_reduction <add>, %24, %cst_11 [2] : vector<1x8x8xf32> to vector<1x8xf32>
      %26 = vector.shape_cast %25 : vector<1x8xf32> to vector<1x8x1xf32>
      %cst_12 = arith.constant 1.000000e+00 : f32
      %27 = vector.broadcast %cst_12 : f32 to vector<1x8x1xf32>
      %28 = arith.divf %27, %26 : vector<1x8x1xf32>
      %29 = vector.broadcast %28 : vector<1x8x1xf32> to vector<1x8x8xf32>
      %30 = arith.mulf %24, %29 : vector<1x8x8xf32>
      %c0_13 = arith.constant 0 : index
      %c0_14 = arith.constant 0 : index
      %c0_15 = arith.constant 0 : index
      %31 = vector.load %arg6[%c0_13, %c0_14, %c0_15] : memref<1x8x8xf32, #tpu.memory_space<vmem>>, vector<1x8x8xf32>
      tpu.vector_store %arg6[%c0_13, %c0_14, %c0_15], %30 {strides = array<i32>} : memref<1x8x8xf32, #tpu.memory_space<vmem>>, vector<1x8x8xf32>,
      %cst_16 = arith.constant 0xFF800000 : f32
      %32 = vector.broadcast %cst_16 : f32 to vector<1x8x1xf32>
      %c0_17 = arith.constant 0 : index
      %c0_18 = arith.constant 0 : index
      %c0_19 = arith.constant 0 : index
      %33 = vector.load %arg7[%c0_17, %c0_18, %c0_19] : memref<1x8x1xf32, #tpu.memory_space<vmem>>, vector<1x8x1xf32>
      tpu.vector_store %arg7[%c0_17, %c0_18, %c0_19], %32 {strides = array<i32>} : memref<1x8x1xf32, #tpu.memory_space<vmem>>, vector<1x8x1xf32>,
      %cst_20 = arith.constant 0.000000e+00 : f32
      %34 = vector.broadcast %cst_20 : f32 to vector<1x8x1xf32>
      %c0_21 = arith.constant 0 : index
      %c0_22 = arith.constant 0 : index
      %c0_23 = arith.constant 0 : index
      %35 = vector.load %arg8[%c0_21, %c0_22, %c0_23] : memref<1x8x1xf32, #tpu.memory_space<vmem>>, vector<1x8x1xf32>
      tpu.vector_store %arg8[%c0_21, %c0_22, %c0_23], %34 {strides = array<i32>} : memref<1x8x1xf32, #tpu.memory_space<vmem>>, vector<1x8x1xf32>,
    } else {
    }
    %c1_i32_6 = arith.constant 1 : i32
    %13 = arith.cmpi eq, %arg1, %c1_i32_6 : i32
    %14 = arith.extui %13 : i1 to i32
    %c0_i32_7 = arith.constant 0 : i32
    %15 = arith.cmpi ne, %14, %c0_i32_7 : i32
    scf.if %15 {
      %c0 = arith.constant 0 : index
      %c0_9 = arith.constant 0 : index
      %c0_10 = arith.constant 0 : index
      %19 = vector.load %arg3[%c0, %c0_9, %c0_10] : memref<1x8x256xf32, #tpu.memory_space<vmem>>, vector<1x8x256xf32>
      %c0_11 = arith.constant 0 : index
      %c0_12 = arith.constant 0 : index
      %c0_13 = arith.constant 0 : index
      %20 = vector.load %arg6[%c0_11, %c0_12, %c0_13] : memref<1x8x8xf32, #tpu.memory_space<vmem>>, vector<1x8x8xf32>
      "tpu.trace_start"() <{level = 10 : i32, message = "bcd,bdn->bcn"}> : () -> ()
      %cst = arith.constant dense<0.000000e+00> : vector<1x8x256xf32>
      %21 = tpu.matmul %20, %19, %cst {dimension_numbers = #tpu.dot_dimension_numbers<[2], [1], [1], [2], [0, 0, 0, 1, 1, 2], [0], [0]>} : vector<1x8x8xf32>, vector<1x8x256xf32>, vector<1x8x256xf32> -> vector<1x8x256xf32>
      "tpu.trace_stop"() : () -> ()
      %c0_14 = arith.constant 0 : index
      %c0_15 = arith.constant 0 : index
      %c0_16 = arith.constant 0 : index
      %22 = vector.load %arg7[%c0_14, %c0_15, %c0_16] : memref<1x8x1xf32, #tpu.memory_space<vmem>>, vector<1x8x1xf32>
      %cst_17 = arith.constant dense<0xFF800000> : vector<1x8xf32>
      %23 = vector.multi_reduction <maximumf>, %21, %cst_17 [2] : vector<1x8x256xf32> to vector<1x8xf32>
      %24 = vector.shape_cast %23 : vector<1x8xf32> to vector<1x8x1xf32>
      %25 = arith.maximumf %22, %24 : vector<1x8x1xf32>
      %26 = vector.broadcast %24 : vector<1x8x1xf32> to vector<1x8x256xf32>
      %27 = arith.subf %21, %26 : vector<1x8x256xf32>
      %28 = math.exp %27 : vector<1x8x256xf32>
      %29 = arith.index_cast %arg2 : i32 to index
      %c0_18 = arith.constant 0 : index
      %c0_19 = arith.constant 0 : index
      %c0_20 = arith.constant 0 : index
      %30 = vector.load %arg9[%29, %c0_18, %c0_19, %c0_20] : memref<1x1x8x1xf32, #tpu.memory_space<vmem>>, vector<1x1x8x1xf32>
      %31 = vector.shape_cast %30 : vector<1x1x8x1xf32> to vector<1x8x1xf32>
      %32 = vector.shape_cast %24 : vector<1x8x1xf32> to vector<1x1x8x1xf32>
      tpu.vector_store %arg9[%29, %c0_18, %c0_19, %c0_20], %32 {strides = array<i32>} : memref<1x1x8x1xf32, #tpu.memory_space<vmem>>, vector<1x1x8x1xf32>,
      %33 = arith.index_cast %arg2 : i32 to index
      %c0_21 = arith.constant 0 : index
      %c0_22 = arith.constant 0 : index
      %c0_23 = arith.constant 0 : index
      %34 = vector.load %arg10[%33, %c0_21, %c0_22, %c0_23] : memref<1x1x8x256xf32, #tpu.memory_space<vmem>>, vector<1x1x8x256xf32>
      %35 = vector.shape_cast %34 : vector<1x1x8x256xf32> to vector<1x8x256xf32>
      %36 = vector.shape_cast %28 : vector<1x8x256xf32> to vector<1x1x8x256xf32>
      tpu.vector_store %arg10[%33, %c0_21, %c0_22, %c0_23], %36 {strides = array<i32>} : memref<1x1x8x256xf32, #tpu.memory_space<vmem>>, vector<1x1x8x256xf32>,
      %c0_24 = arith.constant 0 : index
      %c0_25 = arith.constant 0 : index
      %c0_26 = arith.constant 0 : index
      %37 = vector.load %arg8[%c0_24, %c0_25, %c0_26] : memref<1x8x1xf32, #tpu.memory_space<vmem>>, vector<1x8x1xf32>
      %38 = arith.subf %22, %25 : vector<1x8x1xf32>
      %39 = math.exp %38 : vector<1x8x1xf32>
      %40 = arith.mulf %37, %39 : vector<1x8x1xf32>
      %cst_27 = arith.constant dense<0.000000e+00> : vector<1x8xf32>
      %41 = vector.multi_reduction <add>, %28, %cst_27 [2] : vector<1x8x256xf32> to vector<1x8xf32>
      %42 = vector.shape_cast %41 : vector<1x8xf32> to vector<1x8x1xf32>
      %43 = arith.subf %24, %25 : vector<1x8x1xf32>
      %44 = math.exp %43 : vector<1x8x1xf32>
      %45 = arith.mulf %42, %44 : vector<1x8x1xf32>
      %46 = arith.addf %40, %45 : vector<1x8x1xf32>
      %c0_28 = arith.constant 0 : index
      %c0_29 = arith.constant 0 : index
      %c0_30 = arith.constant 0 : index
      %47 = vector.load %arg8[%c0_28, %c0_29, %c0_30] : memref<1x8x1xf32, #tpu.memory_space<vmem>>, vector<1x8x1xf32>
      tpu.vector_store %arg8[%c0_28, %c0_29, %c0_30], %46 {strides = array<i32>} : memref<1x8x1xf32, #tpu.memory_space<vmem>>, vector<1x8x1xf32>,
      %c0_31 = arith.constant 0 : index
      %c0_32 = arith.constant 0 : index
      %c0_33 = arith.constant 0 : index
      %48 = vector.load %arg7[%c0_31, %c0_32, %c0_33] : memref<1x8x1xf32, #tpu.memory_space<vmem>>, vector<1x8x1xf32>
      tpu.vector_store %arg7[%c0_31, %c0_32, %c0_33], %25 {strides = array<i32>} : memref<1x8x1xf32, #tpu.memory_space<vmem>>, vector<1x8x1xf32>,
    } else {
    }
    %c2_i32 = arith.constant 2 : i32
    %16 = arith.cmpi eq, %arg1, %c2_i32 : i32
    %17 = arith.extui %16 : i1 to i32
    %c0_i32_8 = arith.constant 0 : i32
    %18 = arith.cmpi ne, %17, %c0_i32_8 : i32
    scf.if %18 {
      %c0 = arith.constant 0 : index
      %c0_9 = arith.constant 0 : index
      %c0_10 = arith.constant 0 : index
      %19 = vector.load %arg8[%c0, %c0_9, %c0_10] : memref<1x8x1xf32, #tpu.memory_space<vmem>>, vector<1x8x1xf32>
      %20 = tpu.reciprocal %19 {approx = true} : vector<1x8x1xf32> -> vector<1x8x1xf32>
      %c0_11 = arith.constant 0 : index
      %21 = memref.load %arg4[%c0_11] : memref<1xf32, #tpu.memory_space<smem>>
      %22 = arith.index_cast %arg2 : i32 to index
      %c0_12 = arith.constant 0 : index
      %c0_13 = arith.constant 0 : index
      %c0_14 = arith.constant 0 : index
      %23 = vector.load %arg9[%22, %c0_12, %c0_13, %c0_14] : memref<1x1x8x1xf32, #tpu.memory_space<vmem>>, vector<1x1x8x1xf32>
      %24 = vector.shape_cast %23 : vector<1x1x8x1xf32> to vector<1x8x1xf32>
      %c0_15 = arith.constant 0 : index
      %c0_16 = arith.constant 0 : index
      %c0_17 = arith.constant 0 : index
      %25 = vector.load %arg7[%c0_15, %c0_16, %c0_17] : memref<1x8x1xf32, #tpu.memory_space<vmem>>, vector<1x8x1xf32>
      %26 = arith.subf %24, %25 : vector<1x8x1xf32>
      %27 = math.exp %26 : vector<1x8x1xf32>
      %28 = arith.mulf %27, %20 : vector<1x8x1xf32>
      %29 = arith.index_cast %arg2 : i32 to index
      %c0_18 = arith.constant 0 : index
      %c0_19 = arith.constant 0 : index
      %c0_20 = arith.constant 0 : index
      %30 = vector.load %arg10[%29, %c0_18, %c0_19, %c0_20] : memref<1x1x8x256xf32, #tpu.memory_space<vmem>>, vector<1x1x8x256xf32>
      %31 = vector.shape_cast %30 : vector<1x1x8x256xf32> to vector<1x8x256xf32>
      %32 = vector.broadcast %28 : vector<1x8x1xf32> to vector<1x8x256xf32>
      %33 = arith.mulf %31, %32 : vector<1x8x256xf32>
      %c0_21 = arith.constant 0 : index
      %c0_22 = arith.constant 0 : index
      %c0_23 = arith.constant 0 : index
      %34 = vector.load %arg3[%c0_21, %c0_22, %c0_23] : memref<1x8x256xf32, #tpu.memory_space<vmem>>, vector<1x8x256xf32>
      %35 = vector.broadcast %21 : f32 to vector<1x8x256xf32>
      %36 = arith.mulf %35, %33 : vector<1x8x256xf32>
      %37 = arith.addf %34, %36 : vector<1x8x256xf32>
      %c0_24 = arith.constant 0 : index
      %c0_25 = arith.constant 0 : index
      %c0_26 = arith.constant 0 : index
      %38 = vector.load %arg5[%c0_24, %c0_25, %c0_26] : memref<1x8x256xf32, #tpu.memory_space<vmem>>, vector<1x8x256xf32>
      tpu.vector_store %arg5[%c0_24, %c0_25, %c0_26], %37 {strides = array<i32>} : memref<1x8x256xf32, #tpu.memory_space<vmem>>, vector<1x8x256xf32>,
    } else {
    }
    return
  }
  func.func @transform_0(%arg0: i32, %arg1: i32, %arg2: i32) -> (i32, i32, i32) {
    %c0_i32 = arith.constant 0 : i32
    %c0_i32_0 = arith.constant 0 : i32
    return %arg0, %c0_i32, %arg2 : i32, i32, i32
  }
  func.func @transform_1(%arg0: i32, %arg1: i32, %arg2: i32) -> i32 {
    %c0_i32 = arith.constant 0 : i32
    %c0_i32_0 = arith.constant 0 : i32
    return %c0_i32 : i32
  }
  func.func @transform_2(%arg0: i32, %arg1: i32, %arg2: i32) -> (i32, i32, i32) {
    %c2_i32 = arith.constant 2 : i32
    %0 = arith.cmpi eq, %arg1, %c2_i32 : i32
    %c0_i32 = arith.constant 0 : i32
    %1 = arith.select %0, %arg2, %c0_i32 : i32
    %c0_i32_0 = arith.constant 0 : i32
    %c0_i32_1 = arith.constant 0 : i32
    return %arg0, %c0_i32_0, %1 : i32, i32, i32
  }
}

</mosaic_0001>

<bundles_post_ra>
// kernel: cam_module.1
= control target key start
LH: loop header
LB: loop body
LE: loop exit
PB: predicated region body
PF: predicated region fallthrough
CT: control target
= control target key end

     0   :  { %s716_s11 = smov 0   ;;  %s718_s12 = smov 0   ;;  %s792_s0 = inlined_call_operand.vmem [shape: f32[2,8,256], index: 0, kind: input, shape index: {}, may-alias: {0,2}]   ;;  %s793_s1 = inlined_call_operand.<no memory space> [shape: f32[1], index: 1, kind: input, shape index: {}]   ;;  %s794_s2 = inlined_call_operand.vmem [shape: f32[2,8,256], index: 2, kind: output, shape index: {}, may-alias: {0,2}]  }
   0x1   :  { %7 = sst [smem:[#allocation7]] %s793_s1  ;;  %s720_s13 = smov 0  }
   0x2   :  { %s722_s14 = smov 0   ;;  %s724_s15 = smov 0  }
   0x3 LB: > { %s28_s1 = sadd.s32 1, %s683_s13  ;;  %s32_s16 = sadd.s32 1, %s687_s14  ;;  %s691_s15 = sphi %s724_s15, %s13_s15   ;;  %s687_s14 = sphi %s722_s14, %s798_s14   ;;  %s683_s13 = sphi %s720_s13, %s797_s13   ;;  %s679_s12 = sphi %s718_s12, %s796_s12   ;;  %s675_s11 = sphi %s716_s11, %s795_s11  }
   0x4   : > { %p30_p0 = scmp.ge.s32.totalorder %s28_s1, 3  ;;  %p574_p1 = scmp.ge.s32.totalorder %s691_s15, 1 }
   0x5   : > { %p145_p2 = scmp.lt.s32.totalorder %s691_s15, 7 }
   0x6   : > { %s800_s1 = smov (%p30_p0, %s28_s1), 0  ;;  %s802_s16 = smov (!%p30_p0, %s32_s16), %s687_s14 }
   0x7   : > { %p146_p3 = pnand %p574_p1, %p145_p2  ;;  %p34_p4 = scmp.ge.s32.totalorder %s802_s16, 2 }
   0x8   : > { %p178_p5 = scmp.lt.s32.totalorder (!%p146_p3), %s679_s12, 1  ;;  %p201_p6 = scmp.eq.s32.totalorder (!%p146_p3), %s675_s11, 0 }
   0x9   : > { %s804_s16 = smov (%p34_p4, %s802_s16), 0  ;;  %149 = sbr.rel (%p146_p3) target bundleno = 1251 (0x4e3), region = 28 }
  0x10   : > { %s806_s12 = smov (!%p178_p5, %s679_s12), 1  ;;  %206 = sbr.rel (!%p201_p6) target bundleno = 23 (0x17), region = 32 }
  0x11   : > { %s587_s17 = sshll.u32 %s806_s12, 4  ;;  %vm207_vm0 = vcmask (%p201_p6), 64512   ;;  %v693_v0 = vmov (%p201_p6), 0.0  }
  0x12   : > { %s752_s20 = scalar_lea.vmem %s792_s0, %s587_s17  ;;  %s757_s23 = scalar_lea.vmem %s794_s2, %s587_s17  ;;  %208 = vst.msk [vmem:[#allocation2] sm:$0xff] (%p201_p6), %vm207_vm0, %v693_v0 }
  0x17 PF: > { %p580_p7 = scmp.ne.s32.totalorder %s675_s11, 0 }
  0x18   : > { %v213_v1 = vld [vmem:[%s752_s20 + $0x8] sm:$0xff] (!%p580_p7)  ;;  %v212_v2 = vld [vmem:[%s752_s20] sm:$0xff] (!%p580_p7)  ;;  %vm286_vm1 = vcmask (!%p580_p7), 64512  }
  0x19   : > { %211 = sbr.rel (%p580_p7) target bundleno = 244 (0xf4), region = 36  ;;  %215 = vmatprep.subr.mxu0 (!%p580_p7), %v213_v1  ;;  %279 = vmatprep.mubr.f32.mxu0 (!%p580_p7), %v213_v1  ;;  %v214_v3 = vld [vmem:[#allocation2] sm:$0xff] (!%p580_p7) }
  0x1a   : > { %216 = vmatpush1.xpose.msra.mxu0 (!%p580_p7), %v212_v2 }
  0x1d   : > { %280 = vmatmul.mubr.f32.vlgmr.msra.gmra.mrb[0].mxu0 (!%p580_p7), %v212_v2 }
  0xf0   : > { %v281_v4 = vpop.f32.mrb[0].mxu0 }
  0xf1   : > { %v285_v5 = vadd.f32 %v281_v4, %v214_v3  ;;  %v283_v6 = vpop.f32.mrb[1].mxu0 }
  0xf3   : > { %287 = vst.msk [vmem:[#allocation2] sm:$0xff] %vm286_vm1, %v285_v5 }
  0xf4 PF: > { %p288_p8 = scmp.eq.s32.totalorder %s675_s11, 1 }
  0xf5   : > { %vm294_vm2 = vcmask (%p288_p8), 64512   ;;  %vm308_vm3 = vcmask (%p288_p8), 7168   ;;  %v694_v14 = vmov (%p288_p8), -inf   ;;  %v695_v15 = vmov (%p288_p8), 0.0  }
  0xf6   : > { %292 = sbr.rel (!%p288_p8) target bundleno = 566 (0x236), region = 40  ;;  %309 = vst.msk [vmem:[#allocation3] sm:$0xff] (%p288_p8), %vm308_vm3, %v694_v14  ;;  %310 = vst.msk [vmem:[#allocation4] sm:$0xff] (%p288_p8), %vm308_vm3, %v695_v15 }
  0xfa   : > { %v293_v7 = vld [vmem:[#allocation2] sm:$0xff] (%p288_p8) }
  0xfb   : > { %v295_v8 = vsel (%p288_p8), %vm294_vm2, %v293_v7, inf }
  0xfc   : > { %296 = vmin.xlane.f32.xlu0 (%p288_p8), %v295_v8 }
 0x189   : > { %v297_v9 = vpop.xlane.xlu0 %296 }
 0x18a   : > { %v298_v10 = vsub.f32 %v297_v9, %v293_v7 }
 0x18c   : > { %v299_v11 = vmul.f32 1.442695, %v298_v10 }
 0x18e   : > { %636 = vpow2.f32 %v299_v11 }
 0x198   : > { %v637_v12 = vpop.eup %636 }
 0x199   : > { %v301_v13 = vsel %vm294_vm2, %v637_v12, 0.0 }
 0x19a   : > { %302 = vadd.xlane.f32.xlu0 %v301_v13 }
 0x227   : > { %v303_v16 = vpop.xlane.xlu0 %302 }
 0x228   : > { %638 = vrcp.f32 %v303_v16 }
 0x232   : > { %v639_v17 = vpop.eup %638 }
 0x233   : > { %v306_v18 = vmul.f32 %v639_v17, %v637_v12 }
 0x235   : > { %307 = vst.msk [vmem:[#allocation2] sm:$0xff] %vm294_vm2, %v306_v18 }
 0x236 PF: > { %p582_p9 = scmp.ne.s32.totalorder %s675_s11, 1 }
 0x237   : > { %v315_v19 = vld [vmem:[%s752_s20 + $0x8] sm:$0xff] (!%p582_p9)  ;;  %v314_v20 = vld [vmem:[%s752_s20] sm:$0xff] (!%p582_p9)  ;;  %vm317_vm4 = vcmask (!%p582_p9), 64512   ;;  %v696_v22 = vmov (!%p582_p9), 0.0   ;;  %vm405_vm5 = vcmask (!%p582_p9), 7168   ;;  %v412_v41 = vld [vmem:[#allocation4] sm:$0xff] (!%p582_p9) }
 0x238   : > { %313 = sbr.rel (%p582_p9) target bundleno = 1095 (0x447), region = 44  ;;  %321 = vmatprep.subr.mxu0 (!%p582_p9), %v315_v19  ;;  %385 = vmatprep.mubr.f32.mxu0 (!%p582_p9), %v696_v22  ;;  %v392_v26 = vld [vmem:[#allocation3] sm:$0xff] (!%p582_p9) }
 0x239   : > { %322 = vmatpush1.msra.mxu0 (!%p582_p9), %v314_v20 }
 0x23c   : > { %v316_v21 = vld [vmem:[#allocation2] sm:$0xff] (!%p582_p9) }
 0x23d   : > { %583 = vmatmul.mubr.msk.f32.vlgmr.msra.gmra.mrb[0].mxu0 (!%p582_p9), %vm317_vm4, %v316_v21 }
 0x310   : > { %v387_v23 = vpop.f32.mrb[0].mxu0 }
 0x311   : > { %v389_v24 = vpop.f32.mrb[1].mxu0 }
 0x312   : > { %v393_v25 = vmax.f32 %v387_v23, %v389_v24 }
 0x314   : > { %394 = vmax.xlane.f32.xlu0 %v393_v25 }
 0x3a1   : > { %v395_v27 = vpop.xlane.xlu0 %394 }
 0x3a2   : > { %v396_v28 = vmax.f32 %v392_v26, %v395_v27  ;;  %v397_v29 = vsub.f32 %v387_v23, %v395_v27  ;;  %v398_v30 = vsub.f32 %v389_v24, %v395_v27  ;;  %406 = vst.msk [vmem:[#allocation5] sm:$0xff] %vm405_vm5, %v395_v27 }
 0x3a4   : > { %v399_v31 = vmul.f32 1.442695, %v397_v29  ;;  %v401_v32 = vmul.f32 1.442695, %v398_v30  ;;  %v413_v33 = vsub.f32 %v392_v26, %v396_v28  ;;  %426 = vst.msk [vmem:[#allocation3] sm:$0xff] %vm405_vm5, %v396_v28  ;;  %v420_v37 = vsub.f32 %v395_v27, %v396_v28 }
 0x3a6   : > { %640 = vpow2.f32 %v399_v31  ;;  %v414_v38 = vmul.f32 1.442695, %v413_v33  ;;  %v421_v39 = vmul.f32 1.442695, %v420_v37 }
 0x3a7   : > { %642 = vpow2.f32 %v401_v32 }
 0x3a8   : > { %644 = vpow2.f32 %v414_v38 }
 0x3a9   : > { %646 = vpow2.f32 %v421_v39 }
 0x3b0   : > { %v641_v34 = vpop.eup %640 }
 0x3b1   : > { %v643_v35 = vpop.eup %642  ;;  %410 = vst [vmem:[#allocation6] sm:$0xff] %v641_v34 }
 0x3b2   : > { %411 = vst [vmem:[#allocation6 + $0x8] sm:$0xff] %v643_v35  ;;  %v417_v36 = vadd.f32 %v643_v35, %v641_v34  ;;  %v645_v40 = vpop.eup %644 }
 0x3b3   : > { %v647_v42 = vpop.eup %646  ;;  %v416_v44 = vmul.f32 %v645_v40, %v412_v41 }
 0x3b4   : > { %418 = vadd.xlane.f32.xlu0 %v417_v36 }
 0x441   : > { %v419_v43 = vpop.xlane.xlu0 %418 }
 0x442   : > { %v423_v45 = vmul.f32 %v647_v42, %v419_v43 }
 0x444   : > { %v424_v46 = vadd.f32 %v423_v45, %v416_v44 }
 0x446   : > { %425 = vst.msk [vmem:[#allocation4] sm:$0xff] %vm405_vm5, %v424_v46 }
 0x447 PF: > { %p584_p10 = scmp.ne.s32.totalorder %s675_s11, 2 }
 0x448   : > { %v436_v48 = vld [vmem:[#allocation5] sm:$0xff] (!%p584_p10)  ;;  %v437_v49 = vld [vmem:[#allocation3] sm:$0xff] (!%p584_p10)  ;;  %v697_v50 = vmov (!%p584_p10), 0   ;;  %s433_s24 = sld [smem:[#allocation7]] (!%p584_p10)  ;;  %v445_v56 = vld [vmem:[#allocation6] sm:$0xff] (!%p584_p10) }
 0x449   : > { %430 = sbr.rel (%p584_p10) target bundleno = 1251 (0x4e3), region = 48  ;;  %648 = vset.pattern.permute.xlu0 (!%p584_p10), %v697_v50  ;;  %v438_v51 = vsub.f32 (!%p584_p10), %v436_v48, %v437_v49  ;;  %v446_v57 = vld [vmem:[#allocation6 + $0x8] sm:$0xff] (!%p584_p10)  ;;  %v454_v62 = vld [vmem:[%s752_s20] sm:$0xff] (!%p584_p10) }
 0x44a   : > { %v455_v63 = vld [vmem:[%s752_s20 + $0x8] sm:$0xff] (!%p584_p10) }
 0x44b   : > { %v439_v52 = vmul.f32 (!%p584_p10), 1.442695, %v438_v51 }
 0x44d   : > { %v431_v47 = vld [vmem:[#allocation4] sm:$0xff] (!%p584_p10) }
 0x44e   : > { %649 = vrcp.f32 (!%p584_p10), %v431_v47  ;;  %v456_v58 = vstv (!%p584_p10), %s433_s24 }
 0x44f   : > { %651 = vpow2.f32 (!%p584_p10), %v439_v52 }
 0x458   : > { %v650_v53 = vpop.eup %649 }
 0x459   : > { %v652_v54 = vpop.eup %651 }
 0x45a   : > { %v441_v55 = vmul.f32 %v652_v54, %v650_v53 }
 0x45c   : > { %449 = vperm.xlu0 %648, %v441_v55  }
 0x4db   : > { %v450_v59 = vpop.permute.xlu0 %449 }
 0x4dc   : > { %v452_v60 = vmul.f32 %v450_v59, %v445_v56  ;;  %v453_v61 = vmul.f32 %v450_v59, %v446_v57 }
 0x4de   : > { %v457_v0 = vmul.f32 %v456_v58, %v452_v60  ;;  %v458_v1 = vmul.f32 %v456_v58, %v453_v61 }
 0x4e0   : > { %v459_v2 = vadd.f32 %v457_v0, %v454_v62  ;;  %v460_v3 = vadd.f32 %v458_v1, %v455_v63 }
 0x4e2   : > { %461 = vst [vmem:[%s757_s23] sm:$0xff] %v459_v2  ;;  %462 = vst [vmem:[%s757_s23 + $0x8] sm:$0xff] %v460_v3 }
 0x4e3 PF: > { %s13_s15 = sadd.s32 1, %s691_s15   ;;  %s795_s11 = smov %s683_s13 }
 0x4e4   : > { %p10_p11 = scmp.ge.s32.totalorder %s13_s15, 8   ;;  %s796_s12 = smov %s687_s14 }
 0x4e5   : > { %s797_s13 = smov %s800_s1  ;;  %s798_s14 = smov %s804_s16 }
 0x4e6   :  { %12 = sbr.rel (!%p10_p11) target bundleno = 3 (0x3), region = 82 }

</bundles_post_ra>
